<compile_context>
chip_gen: v6e
topology: v6e:2x2x1
jax: 0.10.0
libtpu: 0.0.40
codegen_flags: <defaults>
</compile_context>

<pallas_src>
import functools

import jax
import jax.numpy as jnp
from jax.experimental import pallas as pl
from jax.experimental.pallas import tpu as pltpu  # noqa: F401  (kept for parity / future tiling)


def _band_gather_kernel(rev_ref, out_ref, *, dim_head):
    """Static banded gather.

    rev_ref: (qkv_chan, 2*dim_head - 1)  -- `relative` reversed along positions
    out_ref: (qkv_chan, dim_head*dim_head) -- flat (i, j) row-major embeddings
    """
    rev = rev_ref[...]  # single VMEM load, ~4 KB
    # dim_head static slice copies: out[:, i*d:(i+1)*d] = rev[:, d-1-i : 2d-1-i]
    for i in range(dim_head):
        out_ref[:, i * dim_head:(i + 1) * dim_head] = (
            rev[:, (dim_head - 1 - i):(2 * dim_head - 1 - i)]
        )


def relative_2d_pos_enc_qkv(relative, dim_head, dim_kq, dim_v):
    """Pallas implementation of Relative2DPosEncQKV.forward().

    relative: (2*dim_kq + dim_v, 2*dim_head - 1) float32
    returns (q_embedding, k_embedding, v_embedding) with shapes
      (dim_kq, dim_head, dim_head), (dim_kq, dim_head, dim_head),
      (dim_v, dim_head, dim_head)
    """
    qkv_chan = relative.shape[0]
    L = 2 * dim_head - 1
    assert relative.shape == (qkv_chan, L)
    n = dim_head * dim_head

    # Reverse the (tiny) parameter along the position axis so every output
    # row-block becomes a contiguous forward lane slice inside the kernel.
    #   rev[:, p] = relative[:, 2*dim_head - 2 - p]
    rev = relative[:, ::-1]

    all_embeddings_flat = pl.pallas_call(
        functools.partial(_band_gather_kernel, dim_head=dim_head),
        out_shape=jax.ShapeDtypeStruct((qkv_chan, n), relative.dtype),
        in_specs=[pl.BlockSpec((qkv_chan, L), lambda: (0, 0))],
        # Flat lane-dense slab (n = dim_head^2 = 256 at defaults, multiple of
        # 128 -> unmasked stores). Reshape/split stay outside the kernel.
        out_specs=pl.BlockSpec((qkv_chan, n), lambda: (0, 0)),
    )(rev)

    # rearrange 'c (x y) -> c x y'
    all_embeddings = all_embeddings_flat.reshape(qkv_chan, dim_head, dim_head)

    # torch.split along channel dim
    q_embedding = all_embeddings[:dim_kq]
    k_embedding = all_embeddings[dim_kq:2 * dim_kq]
    v_embedding = all_embeddings[2 * dim_kq:]
    return q_embedding, k_embedding, v_embedding


def _reference(relative, dim_head, dim_kq, dim_v):
    """Pure-JAX reference mirroring the PyTorch forward exactly."""
    query_index = jnp.arange(dim_head)[None, :]
    key_index = jnp.arange(dim_head)[:, None]
    flatten_index = (key_index - query_index + dim_head - 1).reshape(-1)
    all_embeddings = jnp.take(relative, flatten_index, axis=1)
    all_embeddings = all_embeddings.reshape(relative.shape[0], dim_head, dim_head)
    return (all_embeddings[:dim_kq],
            all_embeddings[dim_kq:2 * dim_kq],
            all_embeddings[2 * dim_kq:])


if __name__ == "__main__":
    # Small shapes consistent with the module defaults.
    dim_head = 16
    dim_v = 16
    dim_kq = 8
    qkv_chan = 2 * dim_kq + dim_v  # 32

    key = jax.random.PRNGKey(0)
    # Deterministic stand-in for torch.randn(qkv_chan, dim_head*2 - 1)
    relative = jax.random.normal(key, (qkv_chan, 2 * dim_head - 1), dtype=jnp.float32)

    q_emb, k_emb, v_emb = relative_2d_pos_enc_qkv(relative, dim_head, dim_kq, dim_v)
    q_emb, k_emb, v_emb = jax.block_until_ready((q_emb, k_emb, v_emb))

    # Correctness check against pure-JAX reference.
    q_ref, k_ref, v_ref = _reference(relative, dim_head, dim_kq, dim_v)
    assert q_emb.shape == (dim_kq, dim_head, dim_head)
    assert k_emb.shape == (dim_kq, dim_head, dim_head)
    assert v_emb.shape == (dim_v, dim_head, dim_head)
    assert jnp.allclose(q_emb, q_ref, atol=1e-6)
    assert jnp.allclose(k_emb, k_ref, atol=1e-6)
    assert jnp.allclose(v_emb, v_ref, atol=1e-6)

    print("KERNEL_OK")
</pallas_src>

<mosaic_0001>
module attributes {stable_mosaic.version = 11 : i64} {
  func.func @_band_gather_kernel(%arg0: memref<32x31xf32, #tpu.memory_space<vmem>>, %arg1: memref<32x256xf32, #tpu.memory_space<vmem>>) attributes {dimension_semantics = [], scalar_prefetch = 0 : i64, scratch_operands = 0 : i64, tpu.core_type = #tpu.core_type<tc>} {
    %c0 = arith.constant 0 : index
    %c0_0 = arith.constant 0 : index
    %0 = vector.load %arg0[%c0, %c0_0] : memref<32x31xf32, #tpu.memory_space<vmem>>, vector<32x31xf32>
    %1 = vector.extract_strided_slice %0 {offsets = [0, 15], sizes = [32, 16], strides = [1, 1]} : vector<32x31xf32> to vector<32x16xf32>
    %c0_1 = arith.constant 0 : index
    %c0_2 = arith.constant 0 : index
    %2 = vector.load %arg1[%c0_1, %c0_2] : memref<32x256xf32, #tpu.memory_space<vmem>>, vector<32x16xf32>
    tpu.vector_store %arg1[%c0_1, %c0_2], %1 {strides = array<i32>} : memref<32x256xf32, #tpu.memory_space<vmem>>, vector<32x16xf32>,
    %3 = vector.extract_strided_slice %0 {offsets = [0, 14], sizes = [32, 16], strides = [1, 1]} : vector<32x31xf32> to vector<32x16xf32>
    %c0_3 = arith.constant 0 : index
    %c16 = arith.constant 16 : index
    %4 = vector.load %arg1[%c0_3, %c16] : memref<32x256xf32, #tpu.memory_space<vmem>>, vector<32x16xf32>
    tpu.vector_store %arg1[%c0_3, %c16], %3 {strides = array<i32>} : memref<32x256xf32, #tpu.memory_space<vmem>>, vector<32x16xf32>,
    %5 = vector.extract_strided_slice %0 {offsets = [0, 13], sizes = [32, 16], strides = [1, 1]} : vector<32x31xf32> to vector<32x16xf32>
    %c0_4 = arith.constant 0 : index
    %c32 = arith.constant 32 : index
    %6 = vector.load %arg1[%c0_4, %c32] : memref<32x256xf32, #tpu.memory_space<vmem>>, vector<32x16xf32>
    tpu.vector_store %arg1[%c0_4, %c32], %5 {strides = array<i32>} : memref<32x256xf32, #tpu.memory_space<vmem>>, vector<32x16xf32>,
    %7 = vector.extract_strided_slice %0 {offsets = [0, 12], sizes = [32, 16], strides = [1, 1]} : vector<32x31xf32> to vector<32x16xf32>
    %c0_5 = arith.constant 0 : index
    %c48 = arith.constant 48 : index
    %8 = vector.load %arg1[%c0_5, %c48] : memref<32x256xf32, #tpu.memory_space<vmem>>, vector<32x16xf32>
    tpu.vector_store %arg1[%c0_5, %c48], %7 {strides = array<i32>} : memref<32x256xf32, #tpu.memory_space<vmem>>, vector<32x16xf32>,
    %9 = vector.extract_strided_slice %0 {offsets = [0, 11], sizes = [32, 16], strides = [1, 1]} : vector<32x31xf32> to vector<32x16xf32>
    %c0_6 = arith.constant 0 : index
    %c64 = arith.constant 64 : index
    %10 = vector.load %arg1[%c0_6, %c64] : memref<32x256xf32, #tpu.memory_space<vmem>>, vector<32x16xf32>
    tpu.vector_store %arg1[%c0_6, %c64], %9 {strides = array<i32>} : memref<32x256xf32, #tpu.memory_space<vmem>>, vector<32x16xf32>,
    %11 = vector.extract_strided_slice %0 {offsets = [0, 10], sizes = [32, 16], strides = [1, 1]} : vector<32x31xf32> to vector<32x16xf32>
    %c0_7 = arith.constant 0 : index
    %c80 = arith.constant 80 : index
    %12 = vector.load %arg1[%c0_7, %c80] : memref<32x256xf32, #tpu.memory_space<vmem>>, vector<32x16xf32>
    tpu.vector_store %arg1[%c0_7, %c80], %11 {strides = array<i32>} : memref<32x256xf32, #tpu.memory_space<vmem>>, vector<32x16xf32>,
    %13 = vector.extract_strided_slice %0 {offsets = [0, 9], sizes = [32, 16], strides = [1, 1]} : vector<32x31xf32> to vector<32x16xf32>
    %c0_8 = arith.constant 0 : index
    %c96 = arith.constant 96 : index
    %14 = vector.load %arg1[%c0_8, %c96] : memref<32x256xf32, #tpu.memory_space<vmem>>, vector<32x16xf32>
    tpu.vector_store %arg1[%c0_8, %c96], %13 {strides = array<i32>} : memref<32x256xf32, #tpu.memory_space<vmem>>, vector<32x16xf32>,
    %15 = vector.extract_strided_slice %0 {offsets = [0, 8], sizes = [32, 16], strides = [1, 1]} : vector<32x31xf32> to vector<32x16xf32>
    %c0_9 = arith.constant 0 : index
    %c112 = arith.constant 112 : index
    %16 = vector.load %arg1[%c0_9, %c112] : memref<32x256xf32, #tpu.memory_space<vmem>>, vector<32x16xf32>
    tpu.vector_store %arg1[%c0_9, %c112], %15 {strides = array<i32>} : memref<32x256xf32, #tpu.memory_space<vmem>>, vector<32x16xf32>,
    %17 = vector.extract_strided_slice %0 {offsets = [0, 7], sizes = [32, 16], strides = [1, 1]} : vector<32x31xf32> to vector<32x16xf32>
    %c0_10 = arith.constant 0 : index
    %c128 = arith.constant 128 : index
    %18 = vector.load %arg1[%c0_10, %c128] : memref<32x256xf32, #tpu.memory_space<vmem>>, vector<32x16xf32>
    tpu.vector_store %arg1[%c0_10, %c128], %17 {strides = array<i32>} : memref<32x256xf32, #tpu.memory_space<vmem>>, vector<32x16xf32>,
    %19 = vector.extract_strided_slice %0 {offsets = [0, 6], sizes = [32, 16], strides = [1, 1]} : vector<32x31xf32> to vector<32x16xf32>
    %c0_11 = arith.constant 0 : index
    %c144 = arith.constant 144 : index
    %20 = vector.load %arg1[%c0_11, %c144] : memref<32x256xf32, #tpu.memory_space<vmem>>, vector<32x16xf32>
    tpu.vector_store %arg1[%c0_11, %c144], %19 {strides = array<i32>} : memref<32x256xf32, #tpu.memory_space<vmem>>, vector<32x16xf32>,
    %21 = vector.extract_strided_slice %0 {offsets = [0, 5], sizes = [32, 16], strides = [1, 1]} : vector<32x31xf32> to vector<32x16xf32>
    %c0_12 = arith.constant 0 : index
    %c160 = arith.constant 160 : index
    %22 = vector.load %arg1[%c0_12, %c160] : memref<32x256xf32, #tpu.memory_space<vmem>>, vector<32x16xf32>
    tpu.vector_store %arg1[%c0_12, %c160], %21 {strides = array<i32>} : memref<32x256xf32, #tpu.memory_space<vmem>>, vector<32x16xf32>,
    %23 = vector.extract_strided_slice %0 {offsets = [0, 4], sizes = [32, 16], strides = [1, 1]} : vector<32x31xf32> to vector<32x16xf32>
    %c0_13 = arith.constant 0 : index
    %c176 = arith.constant 176 : index
    %24 = vector.load %arg1[%c0_13, %c176] : memref<32x256xf32, #tpu.memory_space<vmem>>, vector<32x16xf32>
    tpu.vector_store %arg1[%c0_13, %c176], %23 {strides = array<i32>} : memref<32x256xf32, #tpu.memory_space<vmem>>, vector<32x16xf32>,
    %25 = vector.extract_strided_slice %0 {offsets = [0, 3], sizes = [32, 16], strides = [1, 1]} : vector<32x31xf32> to vector<32x16xf32>
    %c0_14 = arith.constant 0 : index
    %c192 = arith.constant 192 : index
    %26 = vector.load %arg1[%c0_14, %c192] : memref<32x256xf32, #tpu.memory_space<vmem>>, vector<32x16xf32>
    tpu.vector_store %arg1[%c0_14, %c192], %25 {strides = array<i32>} : memref<32x256xf32, #tpu.memory_space<vmem>>, vector<32x16xf32>,
    %27 = vector.extract_strided_slice %0 {offsets = [0, 2], sizes = [32, 16], strides = [1, 1]} : vector<32x31xf32> to vector<32x16xf32>
    %c0_15 = arith.constant 0 : index
    %c208 = arith.constant 208 : index
    %28 = vector.load %arg1[%c0_15, %c208] : memref<32x256xf32, #tpu.memory_space<vmem>>, vector<32x16xf32>
    tpu.vector_store %arg1[%c0_15, %c208], %27 {strides = array<i32>} : memref<32x256xf32, #tpu.memory_space<vmem>>, vector<32x16xf32>,
    %29 = vector.extract_strided_slice %0 {offsets = [0, 1], sizes = [32, 16], strides = [1, 1]} : vector<32x31xf32> to vector<32x16xf32>
    %c0_16 = arith.constant 0 : index
    %c224 = arith.constant 224 : index
    %30 = vector.load %arg1[%c0_16, %c224] : memref<32x256xf32, #tpu.memory_space<vmem>>, vector<32x16xf32>
    tpu.vector_store %arg1[%c0_16, %c224], %29 {strides = array<i32>} : memref<32x256xf32, #tpu.memory_space<vmem>>, vector<32x16xf32>,
    %31 = vector.extract_strided_slice %0 {offsets = [0, 0], sizes = [32, 16], strides = [1, 1]} : vector<32x31xf32> to vector<32x16xf32>
    %c0_17 = arith.constant 0 : index
    %c240 = arith.constant 240 : index
    %32 = vector.load %arg1[%c0_17, %c240] : memref<32x256xf32, #tpu.memory_space<vmem>>, vector<32x16xf32>
    tpu.vector_store %arg1[%c0_17, %c240], %31 {strides = array<i32>} : memref<32x256xf32, #tpu.memory_space<vmem>>, vector<32x16xf32>,
    return
  }
}

</mosaic_0001>

<bundles_post_ra>
// kernel: tpu_custom_call.1
= control target key start
LH: loop header
LB: loop body
LE: loop exit
PB: predicated region body
PF: predicated region fallthrough
CT: control target
= control target key end

     0   :  { %6 = vsyncpa [#allocation3], 0  ;;  %s556_s0 = inlined_call_operand.hbm [shape: f32[32,31], index: 0, kind: input, shape index: {}]   ;;  %s557_s1 = inlined_call_operand.hbm [shape: f32[32,256], index: 1, kind: output, shape index: {}]  }
   0x1   :  { %7 = vsyncpa [#allocation4], 0  ;;  %s378_s6 = smov [#allocation2]  }
   0x2   :  { %s13_s7 = sshll.u32 %s378_s6, 4  ;;  %s14_s7 = int_to_ptr.vmem [resolvable:$true] %s13_s7 }
   0x3   :  { %s342_s8 = scalar_lea.vmem %s14_s7, 512  ;;  %p347_p1 = scmp.lt.s32.totalorder %s14_s7, %s14_s7 }
   0x4   :  { %p343_p0 = scmp.ne.s32.totalorder %s14_s7, %s342_s8  ;;  %p348_p2 = scmp.lt.s32.totalorder %s342_s8, %s342_s8 }
   0x6   :  { %p349_p3 = por %p348_p2, %p347_p1 }
   0x8   :  { %p350_p4 = pnand %p349_p3, %p343_p0 }
   0xa   :  { %353 = shalt.err (!%p350_p4)
}
   0xb   :  { %s379_s9 = smov 128   ;;  %s380_s10 = smov 8  }
   0xc   :  { %19 = dma.hbm_to_vmem [thread:$0]  %s556_s0, 512, %s14_s7, [#allocation3], %s379_s9, %s379_s9, %s380_s10  }
   0xd   :  { %374 = dma.done.wait [#allocation3], 512  }
   0xe   :  { %375 = vsyncadd [#allocation3], 4294966784  ;;  %v413_v0 = vld [vmem:[#allocation2 + $0x10] sm:$0xff]  ;;  %v415_v1 = vld [vmem:[#allocation2] sm:$0xff]  ;;  %s381_s13 = smov 113   ;;  %s382_s0 = smov 2  }
   0xf   :  { %35 = vrot.lane.b32.xlu1 %v413_v0, %s381_s13  ;;  %31 = vrot.lane.b32.xlu0 %v415_v1, %s381_s13  ;;  %v419_v2 = vld [vmem:[#allocation2 + $0x18] sm:$0xff]  ;;  %v421_v3 = vld [vmem:[#allocation2 + $0x8] sm:$0xff]  ;;  %s383_s14 = smov 19   ;;  %s384_s15 = smov 36   ;;  %vm43_vm0 = vcmask 130048   ;;  %vm60_vm1 = vcmask 261248  }
  0x10   :  { %s385_s16 = smov 53   ;;  %s386_s17 = smov 70   ;;  %vm77_vm2 = vcmask 392448   ;;  %vm94_vm3 = vcmask 523648   ;;  %vm111_vm4 = vcmask 654848   ;;  %vm128_vm5 = vcmask 786048  }
  0x11   :  { %s387_s18 = smov 87   ;;  %s388_s19 = smov 104   ;;  %vm145_vm6 = vcmask 917248   ;;  %vm162_vm7 = vcmask 1048448  }
  0x12   :  { %s389_s20 = smov 121   ;;  %s390_s21 = smov 10  }
  0x13   :  { %37 = vrot.lane.b32.xlu1 %v419_v2, %s381_s13  ;;  %33 = vrot.lane.b32.xlu0 %v421_v3, %s381_s13  ;;  %s391_s22 = smov 27   ;;  %s392_s23 = smov 44  }
  0x14   :  { %s393_s24 = smov 61   ;;  %s394_s25 = smov 78  }
  0x15   :  { %s395_s26 = smov 95   ;;  %s396_s27 = smov 112  }
  0x16   :  { %s397_s28 = smov [#allocation5]  }
  0x17   :  { %50 = vrot.lane.b32.xlu1 %v421_v3, %s382_s0  ;;  %48 = vrot.lane.b32.xlu0 %v415_v1, %s382_s0  ;;  %s300_s29 = sshll.u32 %s397_s28, 4  ;;  %s301_s29 = int_to_ptr.vmem [resolvable:$true] %s300_s29 }
  0x18   :  { %s354_s30 = scalar_lea.vmem %s301_s29, 1024  ;;  %p359_p6 = scmp.lt.s32.totalorder %s301_s29, %s301_s29 }
  0x19   :  { %p355_p5 = scmp.ne.s32.totalorder %s301_s29, %s354_s30  ;;  %p360_p7 = scmp.lt.s32.totalorder %s354_s30, %s354_s30 }
  0x1b   :  { %54 = vrot.lane.b32.xlu1 %v419_v2, %s382_s0  ;;  %52 = vrot.lane.b32.xlu0 %v413_v0, %s382_s0  ;;  %p361_p8 = por %p360_p7, %p359_p6 }
  0x1d   :  { %p362_p9 = pnand %p361_p8, %p355_p5 }
  0x1f   :  { %67 = vrot.lane.b32.xlu1 %v421_v3, %s383_s14  ;;  %65 = vrot.lane.b32.xlu0 %v415_v1, %s383_s14 }
  0x23   :  { %71 = vrot.lane.b32.xlu1 %v419_v2, %s383_s14  ;;  %69 = vrot.lane.b32.xlu0 %v413_v0, %s383_s14 }
  0x27   :  { %84 = vrot.lane.b32.xlu1 %v421_v3, %s384_s15  ;;  %82 = vrot.lane.b32.xlu0 %v415_v1, %s384_s15 }
  0x2b   :  { %88 = vrot.lane.b32.xlu1 %v419_v2, %s384_s15  ;;  %86 = vrot.lane.b32.xlu0 %v413_v0, %s384_s15 }
  0x2f   :  { %101 = vrot.lane.b32.xlu1 %v421_v3, %s385_s16  ;;  %99 = vrot.lane.b32.xlu0 %v415_v1, %s385_s16 }
  0x33   :  { %105 = vrot.lane.b32.xlu1 %v419_v2, %s385_s16  ;;  %103 = vrot.lane.b32.xlu0 %v413_v0, %s385_s16 }
  0x37   :  { %118 = vrot.lane.b32.xlu1 %v421_v3, %s386_s17  ;;  %116 = vrot.lane.b32.xlu0 %v415_v1, %s386_s17 }
  0x3b   :  { %122 = vrot.lane.b32.xlu1 %v419_v2, %s386_s17  ;;  %120 = vrot.lane.b32.xlu0 %v413_v0, %s386_s17 }
  0x3f   :  { %135 = vrot.lane.b32.xlu1 %v421_v3, %s387_s18  ;;  %133 = vrot.lane.b32.xlu0 %v415_v1, %s387_s18 }
  0x43   :  { %139 = vrot.lane.b32.xlu1 %v419_v2, %s387_s18  ;;  %137 = vrot.lane.b32.xlu0 %v413_v0, %s387_s18 }
  0x47   :  { %152 = vrot.lane.b32.xlu1 %v421_v3, %s388_s19  ;;  %150 = vrot.lane.b32.xlu0 %v415_v1, %s388_s19 }
  0x4b   :  { %167 = vrot.lane.b32.xlu1 %v415_v1, %s389_s20  ;;  %154 = vrot.lane.b32.xlu0 %v413_v0, %s388_s19 }
  0x4f   :  { %171 = vrot.lane.b32.xlu1 %v413_v0, %s389_s20  ;;  %169 = vrot.lane.b32.xlu0 %v421_v3, %s389_s20 }
  0x53   :  { %183 = vrot.lane.b32.xlu1 %v415_v1, %s390_s21  ;;  %173 = vrot.lane.b32.xlu0 %v419_v2, %s389_s20 }
  0x57   :  { %187 = vrot.lane.b32.xlu1 %v413_v0, %s390_s21  ;;  %185 = vrot.lane.b32.xlu0 %v421_v3, %s390_s21 }
  0x5b   :  { %199 = vrot.lane.b32.xlu1 %v415_v1, %s391_s22  ;;  %189 = vrot.lane.b32.xlu0 %v419_v2, %s390_s21 }
  0x5f   :  { %203 = vrot.lane.b32.xlu1 %v413_v0, %s391_s22  ;;  %201 = vrot.lane.b32.xlu0 %v421_v3, %s391_s22 }
  0x63   :  { %215 = vrot.lane.b32.xlu1 %v415_v1, %s392_s23  ;;  %205 = vrot.lane.b32.xlu0 %v419_v2, %s391_s22 }
  0x67   :  { %219 = vrot.lane.b32.xlu1 %v413_v0, %s392_s23  ;;  %217 = vrot.lane.b32.xlu0 %v421_v3, %s392_s23 }
  0x6b   :  { %231 = vrot.lane.b32.xlu1 %v415_v1, %s393_s24  ;;  %221 = vrot.lane.b32.xlu0 %v419_v2, %s392_s23 }
  0x6f   :  { %235 = vrot.lane.b32.xlu1 %v413_v0, %s393_s24  ;;  %233 = vrot.lane.b32.xlu0 %v421_v3, %s393_s24 }
  0x73   :  { %247 = vrot.lane.b32.xlu1 %v415_v1, %s394_s25  ;;  %237 = vrot.lane.b32.xlu0 %v419_v2, %s393_s24 }
  0x77   :  { %251 = vrot.lane.b32.xlu1 %v413_v0, %s394_s25  ;;  %249 = vrot.lane.b32.xlu0 %v421_v3, %s394_s25 }
  0x7b   :  { %263 = vrot.lane.b32.xlu1 %v415_v1, %s395_s26  ;;  %253 = vrot.lane.b32.xlu0 %v419_v2, %s394_s25 }
  0x7f   :  { %267 = vrot.lane.b32.xlu1 %v413_v0, %s395_s26  ;;  %265 = vrot.lane.b32.xlu0 %v421_v3, %s395_s26 }
  0x81   :  { %v36_v4 = vpop.permute.xlu1 %35  ;;  %v32_v5 = vpop.permute.xlu0 %31 }
  0x82   :  { %46 = vst.msk [vmem:[#allocation5 + $0x20] sm:$0xff] %vm43_vm0, %v36_v4  ;;  %44 = vst.msk [vmem:[#allocation5] sm:$0xff] %vm43_vm0, %v32_v5 }
  0x83   :  { %156 = vrot.lane.b32.xlu1 %v419_v2, %s388_s19  ;;  %269 = vrot.lane.b32.xlu0 %v419_v2, %s395_s26 }
  0x85   :  { %v38_v6 = vpop.permute.xlu1 %37  ;;  %v34_v7 = vpop.permute.xlu0 %33 }
  0x86   :  { %47 = vst.msk [vmem:[#allocation5 + $0x30] sm:$0xff] %vm43_vm0, %v38_v6  ;;  %45 = vst.msk [vmem:[#allocation5 + $0x10] sm:$0xff] %vm43_vm0, %v34_v7 }
  0x87   :  { %281 = vrot.lane.b32.xlu1 %v421_v3, %s396_s27  ;;  %279 = vrot.lane.b32.xlu0 %v415_v1, %s396_s27 }
  0x89   :  { %v51_v8 = vpop.permute.xlu1 %50  ;;  %v49_v9 = vpop.permute.xlu0 %48 }
  0x8a   :  { %62 = vst.msk [vmem:[#allocation5 + $0x10] sm:$0xff] %vm60_vm1, %v51_v8  ;;  %61 = vst.msk [vmem:[#allocation5] sm:$0xff] %vm60_vm1, %v49_v9 }
  0x8b   :  { %285 = vrot.lane.b32.xlu1 %v419_v2, %s396_s27  ;;  %283 = vrot.lane.b32.xlu0 %v413_v0, %s396_s27 }
  0x8d   :  { %v55_v10 = vpop.permute.xlu1 %54  ;;  %v53_v11 = vpop.permute.xlu0 %52 }
  0x8e   :  { %64 = vst.msk [vmem:[#allocation5 + $0x30] sm:$0xff] %vm60_vm1, %v55_v10  ;;  %63 = vst.msk [vmem:[#allocation5 + $0x20] sm:$0xff] %vm60_vm1, %v53_v11 }
  0x91   :  { %v68_v12 = vpop.permute.xlu1 %67  ;;  %v66_v13 = vpop.permute.xlu0 %65 }
  0x92   :  { %79 = vst.msk [vmem:[#allocation5 + $0x10] sm:$0xff] %vm77_vm2, %v68_v12  ;;  %78 = vst.msk [vmem:[#allocation5] sm:$0xff] %vm77_vm2, %v66_v13 }
  0x95   :  { %v72_v14 = vpop.permute.xlu1 %71  ;;  %v70_v15 = vpop.permute.xlu0 %69 }
  0x96   :  { %81 = vst.msk [vmem:[#allocation5 + $0x30] sm:$0xff] %vm77_vm2, %v72_v14  ;;  %80 = vst.msk [vmem:[#allocation5 + $0x20] sm:$0xff] %vm77_vm2, %v70_v15 }
  0x99   :  { %v85_v16 = vpop.permute.xlu1 %84  ;;  %v83_v17 = vpop.permute.xlu0 %82 }
  0x9a   :  { %96 = vst.msk [vmem:[#allocation5 + $0x10] sm:$0xff] %vm94_vm3, %v85_v16  ;;  %95 = vst.msk [vmem:[#allocation5] sm:$0xff] %vm94_vm3, %v83_v17 }
  0x9d   :  { %v89_v18 = vpop.permute.xlu1 %88  ;;  %v87_v19 = vpop.permute.xlu0 %86 }
  0x9e   :  { %98 = vst.msk [vmem:[#allocation5 + $0x30] sm:$0xff] %vm94_vm3, %v89_v18  ;;  %97 = vst.msk [vmem:[#allocation5 + $0x20] sm:$0xff] %vm94_vm3, %v87_v19 }
  0xa1   :  { %v102_v20 = vpop.permute.xlu1 %101  ;;  %v100_v21 = vpop.permute.xlu0 %99 }
  0xa2   :  { %113 = vst.msk [vmem:[#allocation5 + $0x10] sm:$0xff] %vm111_vm4, %v102_v20  ;;  %112 = vst.msk [vmem:[#allocation5] sm:$0xff] %vm111_vm4, %v100_v21 }
  0xa5   :  { %v106_v22 = vpop.permute.xlu1 %105  ;;  %v104_v23 = vpop.permute.xlu0 %103 }
  0xa6   :  { %115 = vst.msk [vmem:[#allocation5 + $0x30] sm:$0xff] %vm111_vm4, %v106_v22  ;;  %114 = vst.msk [vmem:[#allocation5 + $0x20] sm:$0xff] %vm111_vm4, %v104_v23 }
  0xa9   :  { %v119_v24 = vpop.permute.xlu1 %118  ;;  %v117_v25 = vpop.permute.xlu0 %116 }
  0xaa   :  { %130 = vst.msk [vmem:[#allocation5 + $0x10] sm:$0xff] %vm128_vm5, %v119_v24  ;;  %129 = vst.msk [vmem:[#allocation5] sm:$0xff] %vm128_vm5, %v117_v25 }
  0xad   :  { %v123_v26 = vpop.permute.xlu1 %122  ;;  %v121_v27 = vpop.permute.xlu0 %120 }
  0xae   :  { %132 = vst.msk [vmem:[#allocation5 + $0x30] sm:$0xff] %vm128_vm5, %v123_v26  ;;  %131 = vst.msk [vmem:[#allocation5 + $0x20] sm:$0xff] %vm128_vm5, %v121_v27 }
  0xb1   :  { %v136_v28 = vpop.permute.xlu1 %135  ;;  %v134_v29 = vpop.permute.xlu0 %133 }
  0xb2   :  { %147 = vst.msk [vmem:[#allocation5 + $0x10] sm:$0xff] %vm145_vm6, %v136_v28  ;;  %146 = vst.msk [vmem:[#allocation5] sm:$0xff] %vm145_vm6, %v134_v29 }
  0xb5   :  { %v140_v30 = vpop.permute.xlu1 %139  ;;  %v138_v31 = vpop.permute.xlu0 %137 }
  0xb6   :  { %149 = vst.msk [vmem:[#allocation5 + $0x30] sm:$0xff] %vm145_vm6, %v140_v30  ;;  %148 = vst.msk [vmem:[#allocation5 + $0x20] sm:$0xff] %vm145_vm6, %v138_v31 }
  0xb9   :  { %v153_v32 = vpop.permute.xlu1 %152  ;;  %v151_v33 = vpop.permute.xlu0 %150 }
  0xba   :  { %164 = vst.msk [vmem:[#allocation5 + $0x10] sm:$0xff] %vm162_vm7, %v153_v32  ;;  %163 = vst.msk [vmem:[#allocation5] sm:$0xff] %vm162_vm7, %v151_v33 }
  0xbd   :  { %v168_v34 = vpop.permute.xlu1 %167  ;;  %v155_v35 = vpop.permute.xlu0 %154 }
  0xbe   :  { %179 = vst.msk [vmem:[#allocation5 + $0x8] sm:$0xff] %vm43_vm0, %v168_v34 }
  0xbf   :  { %165 = vst.msk [vmem:[#allocation5 + $0x20] sm:$0xff] %vm162_vm7, %v155_v35 }
  0xc1   :  { %v172_v36 = vpop.permute.xlu1 %171  ;;  %v170_v37 = vpop.permute.xlu0 %169 }
  0xc2   :  { %181 = vst.msk [vmem:[#allocation5 + $0x28] sm:$0xff] %vm43_vm0, %v172_v36  ;;  %180 = vst.msk [vmem:[#allocation5 + $0x18] sm:$0xff] %vm43_vm0, %v170_v37 }
  0xc5   :  { %v184_v38 = vpop.permute.xlu1 %183  ;;  %v174_v39 = vpop.permute.xlu0 %173 }
  0xc6   :  { %195 = vst.msk [vmem:[#allocation5 + $0x8] sm:$0xff] %vm60_vm1, %v184_v38 }
  0xc7   :  { %182 = vst.msk [vmem:[#allocation5 + $0x38] sm:$0xff] %vm43_vm0, %v174_v39 }
  0xc9   :  { %v188_v40 = vpop.permute.xlu1 %187  ;;  %v186_v41 = vpop.permute.xlu0 %185 }
  0xca   :  { %197 = vst.msk [vmem:[#allocation5 + $0x28] sm:$0xff] %vm60_vm1, %v188_v40  ;;  %196 = vst.msk [vmem:[#allocation5 + $0x18] sm:$0xff] %vm60_vm1, %v186_v41 }
  0xcd   :  { %v200_v42 = vpop.permute.xlu1 %199  ;;  %v190_v43 = vpop.permute.xlu0 %189 }
  0xce   :  { %211 = vst.msk [vmem:[#allocation5 + $0x8] sm:$0xff] %vm77_vm2, %v200_v42 }
  0xcf   :  { %198 = vst.msk [vmem:[#allocation5 + $0x38] sm:$0xff] %vm60_vm1, %v190_v43 }
  0xd1   :  { %v204_v44 = vpop.permute.xlu1 %203  ;;  %v202_v45 = vpop.permute.xlu0 %201 }
  0xd2   :  { %213 = vst.msk [vmem:[#allocation5 + $0x28] sm:$0xff] %vm77_vm2, %v204_v44  ;;  %212 = vst.msk [vmem:[#allocation5 + $0x18] sm:$0xff] %vm77_vm2, %v202_v45 }
  0xd5   :  { %v216_v46 = vpop.permute.xlu1 %215  ;;  %v206_v47 = vpop.permute.xlu0 %205 }
  0xd6   :  { %227 = vst.msk [vmem:[#allocation5 + $0x8] sm:$0xff] %vm94_vm3, %v216_v46 }
  0xd7   :  { %214 = vst.msk [vmem:[#allocation5 + $0x38] sm:$0xff] %vm77_vm2, %v206_v47 }
  0xd9   :  { %v220_v48 = vpop.permute.xlu1 %219  ;;  %v218_v49 = vpop.permute.xlu0 %217 }
  0xda   :  { %229 = vst.msk [vmem:[#allocation5 + $0x28] sm:$0xff] %vm94_vm3, %v220_v48  ;;  %228 = vst.msk [vmem:[#allocation5 + $0x18] sm:$0xff] %vm94_vm3, %v218_v49 }
  0xdd   :  { %v232_v50 = vpop.permute.xlu1 %231  ;;  %v222_v51 = vpop.permute.xlu0 %221 }
  0xde   :  { %243 = vst.msk [vmem:[#allocation5 + $0x8] sm:$0xff] %vm111_vm4, %v232_v50 }
  0xdf   :  { %230 = vst.msk [vmem:[#allocation5 + $0x38] sm:$0xff] %vm94_vm3, %v222_v51 }
  0xe1   :  { %v236_v52 = vpop.permute.xlu1 %235  ;;  %v234_v53 = vpop.permute.xlu0 %233 }
  0xe2   :  { %245 = vst.msk [vmem:[#allocation5 + $0x28] sm:$0xff] %vm111_vm4, %v236_v52  ;;  %244 = vst.msk [vmem:[#allocation5 + $0x18] sm:$0xff] %vm111_vm4, %v234_v53 }
  0xe5   :  { %v248_v54 = vpop.permute.xlu1 %247  ;;  %v238_v55 = vpop.permute.xlu0 %237 }
  0xe6   :  { %259 = vst.msk [vmem:[#allocation5 + $0x8] sm:$0xff] %vm128_vm5, %v248_v54 }
  0xe7   :  { %246 = vst.msk [vmem:[#allocation5 + $0x38] sm:$0xff] %vm111_vm4, %v238_v55 }
  0xe9   :  { %v252_v56 = vpop.permute.xlu1 %251  ;;  %v250_v57 = vpop.permute.xlu0 %249 }
  0xea   :  { %261 = vst.msk [vmem:[#allocation5 + $0x28] sm:$0xff] %vm128_vm5, %v252_v56  ;;  %260 = vst.msk [vmem:[#allocation5 + $0x18] sm:$0xff] %vm128_vm5, %v250_v57 }
  0xed   :  { %v264_v58 = vpop.permute.xlu1 %263  ;;  %v254_v59 = vpop.permute.xlu0 %253 }
  0xee   :  { %275 = vst.msk [vmem:[#allocation5 + $0x8] sm:$0xff] %vm145_vm6, %v264_v58 }
  0xef   :  { %262 = vst.msk [vmem:[#allocation5 + $0x38] sm:$0xff] %vm128_vm5, %v254_v59 }
  0xf1   :  { %v268_v60 = vpop.permute.xlu1 %267  ;;  %v266_v61 = vpop.permute.xlu0 %265 }
  0xf2   :  { %277 = vst.msk [vmem:[#allocation5 + $0x28] sm:$0xff] %vm145_vm6, %v268_v60  ;;  %276 = vst.msk [vmem:[#allocation5 + $0x18] sm:$0xff] %vm145_vm6, %v266_v61 }
  0xf5   :  { %v157_v62 = vpop.permute.xlu1 %156  ;;  %v270_v63 = vpop.permute.xlu0 %269 }
  0xf6   :  { %166 = vst.msk [vmem:[#allocation5 + $0x30] sm:$0xff] %vm162_vm7, %v157_v62 }
  0xf7   :  { %278 = vst.msk [vmem:[#allocation5 + $0x38] sm:$0xff] %vm145_vm6, %v270_v63 }
  0xf9   :  { %v282_v0 = vpop.permute.xlu1 %281  ;;  %v280_v1 = vpop.permute.xlu0 %279 }
  0xfa   :  { %292 = vst.msk [vmem:[#allocation5 + $0x18] sm:$0xff] %vm162_vm7, %v282_v0  ;;  %291 = vst.msk [vmem:[#allocation5 + $0x8] sm:$0xff] %vm162_vm7, %v280_v1 }
  0xfd   :  { %v286_v2 = vpop.permute.xlu1 %285  ;;  %v284_v3 = vpop.permute.xlu0 %283 }
  0xfe   :  { %294 = vst.msk [vmem:[#allocation5 + $0x38] sm:$0xff] %vm162_vm7, %v286_v2  ;;  %293 = vst.msk [vmem:[#allocation5 + $0x28] sm:$0xff] %vm162_vm7, %v284_v3 }
  0xff   :  { %365 = shalt.err (!%p362_p9)
}
 0x100   :  { %s398_s2 = smov 256   ;;  %s399_s3 = smov 16  }
 0x101   :  { %306 = dma.vmem_to_hbm [thread:$0]  %s301_s29, 1024, %s557_s1, [#allocation4], %s398_s2, %s398_s2, %s399_s3  }
 0x102   :  { %376 = dma.done.wait [#allocation4], 1024  }
 0x103   :  { %377 = vsyncadd [#allocation4], 4294966272 }
 0x104   :  { %310 = vsyncpa [#allocation3], 1 }
 0x105   :  { %311 = vsyncpa [#allocation4], 1 }

</bundles_post_ra>
